<compile_context>
chip_gen: v7x
topology: tpu7x:2x2x1
jax: 0.10.0
libtpu: 0.0.40
codegen_flags: <defaults>
</compile_context>

<pallas_src>
import functools

import jax
import jax.numpy as jnp
from jax.experimental import pallas as pl
from jax.experimental.pallas import tpu as pltpu


def mha_kernel(q_ref, k_ref, v_ref, wq_ref, wk_ref, wv_ref, wo_ref, out_ref,
               *, n_head, head_dim, inv_sqrt_scale):
    """One (batch, q-tile) grid point: attention over all heads.

    Blocks:
      q_ref               : (1, Tq, E)
      k_ref / v_ref       : (1, S,  E)
      wq_ref/wk_ref/wv_ref: (E, E)   fused per-head projections (heads stacked on columns)
      wo_ref              : (E, E)   W_O^T (rows in head-concat order)
      out_ref             : (1, Tq, E)
    """
    q = q_ref[0]            # (Tq, E)
    k = k_ref[0]            # (S,  E)
    v = v_ref[0]            # (S,  E)
    wq = wq_ref[...]        # (E, E)
    wk = wk_ref[...]
    wv = wv_ref[...]
    wo = wo_ref[...]        # (E, E)

    # Fused projections across all heads (one MXU pass each, f32 accumulation).
    # Scale folded into Q: cheaper than scaling the (Tq, S) score matrix per head.
    Q = jnp.dot(q, wq, preferred_element_type=jnp.float32) * inv_sqrt_scale  # (Tq, E)
    K = jnp.dot(k, wk, preferred_element_type=jnp.float32)                   # (S,  E)
    V = jnp.dot(v, wv, preferred_element_type=jnp.float32)                   # (S,  E)

    tq = q.shape[0]
    emb = wo.shape[1]
    acc = jnp.zeros((tq, emb), jnp.float32)

    for h in range(n_head):
        lo = h * head_dim
        hi = lo + head_dim
        Qh = Q[:, lo:hi]    # (Tq, Dh)
        Kh = K[:, lo:hi]    # (S,  Dh)
        Vh = V[:, lo:hi]    # (S,  Dh)

        # Q K^T without an explicit transpose: contract the shared Dh axis.
        s = jax.lax.dot_general(Qh, Kh, (((1,), (1,)), ((), ())),
                                preferred_element_type=jnp.float32)          # (Tq, S)

        # TODO(synk): optional attention mask (mask == 0 -> -inf) not implemented;
        # the module is exercised with mask=None.

        s_max = jnp.max(s, axis=-1, keepdims=True)
        p = jnp.exp(s - s_max)
        p = p * pl.reciprocal(jnp.sum(p, axis=-1, keepdims=True), approx=True)

        head_out = jnp.dot(p, Vh, preferred_element_type=jnp.float32)        # (Tq, Dh)

        # concat over heads followed by W_O  ==  sum_h head_out_h @ wo[h*Dh:(h+1)*Dh, :]
        acc = acc + jnp.dot(head_out, wo[lo:hi, :],
                            preferred_element_type=jnp.float32)

    out_ref[0] = acc.astype(out_ref.dtype)


def multi_head_attn(query, key, value, wq_full, wk_full, wv_full, wo_full,
                    *, emb_dim, n_head, block_q=None):
    B, S, E = query.shape
    assert E == emb_dim and emb_dim % n_head == 0
    head_dim = emb_dim // n_head
    inv_sqrt_scale = float(1.0 / (head_dim ** 0.5))

    # Tile the query sequence dim when it is large; fall back to the full sequence.
    if block_q is None or block_q <= 0 or S % block_q != 0:
        block_q = S
    n_q = S // block_q

    q_spec = pl.BlockSpec((1, block_q, E), lambda b, qi: (b, qi, 0))
    kv_spec = pl.BlockSpec((1, S, E), lambda b, qi: (b, 0, 0))
    w_spec = pl.BlockSpec((E, E), lambda b, qi: (0, 0))       # resident: fetched once
    out_spec = pl.BlockSpec((1, block_q, E), lambda b, qi: (b, qi, 0))

    # Advisory cost estimate so XLA schedules/overlaps this call sensibly.
    itemsize = jnp.dtype(query.dtype).itemsize
    cost = pl.CostEstimate(
        flops=8 * B * S * E * E + 4 * B * S * S * E,
        transcendentals=B * n_head * S * S + B * n_head * S,
        bytes_accessed=(4 * B * S * E + 4 * E * E) * itemsize,
    )

    return pl.pallas_call(
        functools.partial(mha_kernel, n_head=n_head, head_dim=head_dim,
                          inv_sqrt_scale=inv_sqrt_scale),
        out_shape=jax.ShapeDtypeStruct((B, S, E), query.dtype),
        grid_spec=pltpu.PrefetchScalarGridSpec(
            num_scalar_prefetch=0,
            grid=(B, n_q),
            in_specs=[q_spec, kv_spec, kv_spec, w_spec, w_spec, w_spec, w_spec],
            out_specs=out_spec,
        ),
        compiler_params=pltpu.CompilerParams(
            # No cross-step accumulation -> both grid axes are independent
            # (also lets the second TensorCore on v7x pick up q tiles when B is small).
            dimension_semantics=("parallel", "parallel"),
            vmem_limit_bytes=64 * 1024 * 1024,
        ),
        cost_estimate=cost,
    )(query, key, value, wq_full, wk_full, wv_full, wo_full)


def mha_reference(query, key, value, wq_full, wk_full, wv_full, wo_full,
                  *, emb_dim, n_head):
    """Pure-JAX reference mirroring the PyTorch forward."""
    head_dim = emb_dim // n_head
    Q = query @ wq_full
    K = key @ wk_full
    V = value @ wv_full
    scale = jnp.sqrt(jnp.float32(head_dim))
    outs = []
    for h in range(n_head):
        sl = slice(h * head_dim, (h + 1) * head_dim)
        s = jnp.einsum('bqd,bkd->bqk', Q[..., sl], K[..., sl]) / scale
        p = jax.nn.softmax(s, axis=-1)
        outs.append(jnp.einsum('bqk,bkd->bqd', p, V[..., sl]))
    return jnp.concatenate(outs, axis=-1) @ wo_full


if __name__ == "__main__":
    B, S, emb_dim, n_head = 2, 8, 32, 4

    key0 = jax.random.PRNGKey(0)
    kq, kk, kv, kwq, kwk, kwv, kwo = jax.random.split(key0, 7)

    query = jax.random.normal(kq, (B, S, emb_dim), dtype=jnp.float32)
    key_t = jax.random.normal(kk, (B, S, emb_dim), dtype=jnp.float32)
    value = jax.random.normal(kv, (B, S, emb_dim), dtype=jnp.float32)

    # Deterministic parameter init (Linear weights, bias=False), fused & pre-transposed:
    #   wq_full/wk_full/wv_full : (E, E)  columns [h*Dh:(h+1)*Dh] = head h's projection
    #   wo_full                 : (E, E)  = W_O.weight.T
    scale_init = 1.0 / jnp.sqrt(jnp.float32(emb_dim))
    wq_full = jax.random.uniform(kwq, (emb_dim, emb_dim), jnp.float32, -1, 1) * scale_init
    wk_full = jax.random.uniform(kwk, (emb_dim, emb_dim), jnp.float32, -1, 1) * scale_init
    wv_full = jax.random.uniform(kwv, (emb_dim, emb_dim), jnp.float32, -1, 1) * scale_init
    wo_full = jax.random.uniform(kwo, (emb_dim, emb_dim), jnp.float32, -1, 1) * scale_init

    out = multi_head_attn(query, key_t, value, wq_full, wk_full, wv_full, wo_full,
                          emb_dim=emb_dim, n_head=n_head)
    out = jax.block_until_ready(out)

    ref = mha_reference(query, key_t, value, wq_full, wk_full, wv_full, wo_full,
                        emb_dim=emb_dim, n_head=n_head)
    # Tolerance loosened slightly for pl.reciprocal(approx=True) in the softmax.
    assert jnp.allclose(out, ref, atol=2e-3, rtol=2e-3), \
        f"max abs err {jnp.max(jnp.abs(out - ref))}"

    print("KERNEL_OK")
</pallas_src>

<mosaic_0001>
module attributes {stable_mosaic.version = 11 : i64} {
  func.func @mha_kernel(%arg0: i32, %arg1: i32, %arg2: memref<1x8x32xf32, #tpu.memory_space<vmem>>, %arg3: memref<1x8x32xf32, #tpu.memory_space<vmem>>, %arg4: memref<1x8x32xf32, #tpu.memory_space<vmem>>, %arg5: memref<32x32xf32, #tpu.memory_space<vmem>>, %arg6: memref<32x32xf32, #tpu.memory_space<vmem>>, %arg7: memref<32x32xf32, #tpu.memory_space<vmem>>, %arg8: memref<32x32xf32, #tpu.memory_space<vmem>>, %arg9: memref<1x8x32xf32, #tpu.memory_space<vmem>>) attributes {dimension_semantics = [#tpu.dimension_semantics<parallel>, #tpu.dimension_semantics<parallel>], iteration_bounds = array<i64: 2, 1>, scalar_prefetch = 0 : i64, scratch_operands = 0 : i64, tpu.core_type = #tpu.core_type<tc>, window_params = [{transform_indices = @transform_0, window_bounds = array<i64: 1, 8, 32>}, {transform_indices = @transform_1, window_bounds = array<i64: 1, 8, 32>}, {transform_indices = @transform_2, window_bounds = array<i64: 1, 8, 32>}, {pipeline_mode = #tpu.pipeline_mode<synchronous>, transform_indices = @transform_3, window_bounds = array<i64: 32, 32>}, {pipeline_mode = #tpu.pipeline_mode<synchronous>, transform_indices = @transform_4, window_bounds = array<i64: 32, 32>}, {pipeline_mode = #tpu.pipeline_mode<synchronous>, transform_indices = @transform_5, window_bounds = array<i64: 32, 32>}, {pipeline_mode = #tpu.pipeline_mode<synchronous>, transform_indices = @transform_6, window_bounds = array<i64: 32, 32>}, {transform_indices = @transform_7, window_bounds = array<i64: 1, 8, 32>}]} {
    %c0 = arith.constant 0 : index
    %c0_0 = arith.constant 0 : index
    %c0_1 = arith.constant 0 : index
    %0 = vector.load %arg2[%c0, %c0_0, %c0_1] : memref<1x8x32xf32, #tpu.memory_space<vmem>>, vector<1x8x32xf32>
    %1 = vector.shape_cast %0 : vector<1x8x32xf32> to vector<8x32xf32>
    %c0_2 = arith.constant 0 : index
    %c0_3 = arith.constant 0 : index
    %c0_4 = arith.constant 0 : index
    %2 = vector.load %arg3[%c0_2, %c0_3, %c0_4] : memref<1x8x32xf32, #tpu.memory_space<vmem>>, vector<1x8x32xf32>
    %3 = vector.shape_cast %2 : vector<1x8x32xf32> to vector<8x32xf32>
    %c0_5 = arith.constant 0 : index
    %c0_6 = arith.constant 0 : index
    %c0_7 = arith.constant 0 : index
    %4 = vector.load %arg4[%c0_5, %c0_6, %c0_7] : memref<1x8x32xf32, #tpu.memory_space<vmem>>, vector<1x8x32xf32>
    %5 = vector.shape_cast %4 : vector<1x8x32xf32> to vector<8x32xf32>
    %c0_8 = arith.constant 0 : index
    %c0_9 = arith.constant 0 : index
    %6 = vector.load %arg5[%c0_8, %c0_9] : memref<32x32xf32, #tpu.memory_space<vmem>>, vector<32x32xf32>
    %c0_10 = arith.constant 0 : index
    %c0_11 = arith.constant 0 : index
    %7 = vector.load %arg6[%c0_10, %c0_11] : memref<32x32xf32, #tpu.memory_space<vmem>>, vector<32x32xf32>
    %c0_12 = arith.constant 0 : index
    %c0_13 = arith.constant 0 : index
    %8 = vector.load %arg7[%c0_12, %c0_13] : memref<32x32xf32, #tpu.memory_space<vmem>>, vector<32x32xf32>
    %c0_14 = arith.constant 0 : index
    %c0_15 = arith.constant 0 : index
    %9 = vector.load %arg8[%c0_14, %c0_15] : memref<32x32xf32, #tpu.memory_space<vmem>>, vector<32x32xf32>
    %cst = arith.constant dense<0.000000e+00> : vector<8x32xf32>
    %10 = tpu.matmul %1, %6, %cst {dimension_numbers = #tpu.dot_dimension_numbers<[1], [0], [0], [1], [0, 0, 1, 1], [], []>} : vector<8x32xf32>, vector<32x32xf32>, vector<8x32xf32> -> vector<8x32xf32>
    %cst_16 = arith.constant 0.353553385 : f32
    %11 = vector.broadcast %cst_16 : f32 to vector<8x32xf32>
    %12 = arith.mulf %10, %11 : vector<8x32xf32>
    %cst_17 = arith.constant dense<0.000000e+00> : vector<8x32xf32>
    %13 = tpu.matmul %3, %7, %cst_17 {dimension_numbers = #tpu.dot_dimension_numbers<[1], [0], [0], [1], [0, 0, 1, 1], [], []>} : vector<8x32xf32>, vector<32x32xf32>, vector<8x32xf32> -> vector<8x32xf32>
    %cst_18 = arith.constant dense<0.000000e+00> : vector<8x32xf32>
    %14 = tpu.matmul %5, %8, %cst_18 {dimension_numbers = #tpu.dot_dimension_numbers<[1], [0], [0], [1], [0, 0, 1, 1], [], []>} : vector<8x32xf32>, vector<32x32xf32>, vector<8x32xf32> -> vector<8x32xf32>
    %cst_19 = arith.constant 0.000000e+00 : f32
    %15 = vector.broadcast %cst_19 : f32 to vector<8x32xf32>
    %16 = vector.extract_strided_slice %12 {offsets = [0, 0], sizes = [8, 8], strides = [1, 1]} : vector<8x32xf32> to vector<8x8xf32>
    %17 = vector.extract_strided_slice %13 {offsets = [0, 0], sizes = [8, 8], strides = [1, 1]} : vector<8x32xf32> to vector<8x8xf32>
    %18 = vector.extract_strided_slice %14 {offsets = [0, 0], sizes = [8, 8], strides = [1, 1]} : vector<8x32xf32> to vector<8x8xf32>
    %cst_20 = arith.constant dense<0.000000e+00> : vector<8x8xf32>
    %19 = tpu.matmul %16, %17, %cst_20 {dimension_numbers = #tpu.dot_dimension_numbers<[1], [1], [0], [0], [0, 0, 1, 0], [], []>} : vector<8x8xf32>, vector<8x8xf32>, vector<8x8xf32> -> vector<8x8xf32>
    %cst_21 = arith.constant dense<0xFF800000> : vector<8xf32>
    %20 = vector.multi_reduction <maximumf>, %19, %cst_21 [1] : vector<8x8xf32> to vector<8xf32>
    %21 = vector.shape_cast %20 : vector<8xf32> to vector<8x1xf32>
    %22 = vector.broadcast %21 : vector<8x1xf32> to vector<8x8xf32>
    %23 = arith.subf %19, %22 : vector<8x8xf32>
    %24 = math.exp %23 : vector<8x8xf32>
    %cst_22 = arith.constant dense<0.000000e+00> : vector<8xf32>
    %25 = vector.multi_reduction <add>, %24, %cst_22 [1] : vector<8x8xf32> to vector<8xf32>
    %26 = vector.shape_cast %25 : vector<8xf32> to vector<8x1xf32>
    %27 = tpu.reciprocal %26 {approx = true} : vector<8x1xf32> -> vector<8x1xf32>
    %28 = vector.broadcast %27 : vector<8x1xf32> to vector<8x8xf32>
    %29 = arith.mulf %24, %28 : vector<8x8xf32>
    %cst_23 = arith.constant dense<0.000000e+00> : vector<8x8xf32>
    %30 = tpu.matmul %29, %18, %cst_23 {dimension_numbers = #tpu.dot_dimension_numbers<[1], [0], [0], [1], [0, 0, 1, 1], [], []>} : vector<8x8xf32>, vector<8x8xf32>, vector<8x8xf32> -> vector<8x8xf32>
    %31 = vector.extract_strided_slice %9 {offsets = [0, 0], sizes = [8, 32], strides = [1, 1]} : vector<32x32xf32> to vector<8x32xf32>
    %cst_24 = arith.constant dense<0.000000e+00> : vector<8x32xf32>
    %32 = tpu.matmul %30, %31, %cst_24 {dimension_numbers = #tpu.dot_dimension_numbers<[1], [0], [0], [1], [0, 0, 1, 1], [], []>} : vector<8x8xf32>, vector<8x32xf32>, vector<8x32xf32> -> vector<8x32xf32>
    %33 = arith.addf %15, %32 : vector<8x32xf32>
    %34 = vector.extract_strided_slice %12 {offsets = [0, 8], sizes = [8, 8], strides = [1, 1]} : vector<8x32xf32> to vector<8x8xf32>
    %35 = vector.extract_strided_slice %13 {offsets = [0, 8], sizes = [8, 8], strides = [1, 1]} : vector<8x32xf32> to vector<8x8xf32>
    %36 = vector.extract_strided_slice %14 {offsets = [0, 8], sizes = [8, 8], strides = [1, 1]} : vector<8x32xf32> to vector<8x8xf32>
    %cst_25 = arith.constant dense<0.000000e+00> : vector<8x8xf32>
    %37 = tpu.matmul %34, %35, %cst_25 {dimension_numbers = #tpu.dot_dimension_numbers<[1], [1], [0], [0], [0, 0, 1, 0], [], []>} : vector<8x8xf32>, vector<8x8xf32>, vector<8x8xf32> -> vector<8x8xf32>
    %cst_26 = arith.constant dense<0xFF800000> : vector<8xf32>
    %38 = vector.multi_reduction <maximumf>, %37, %cst_26 [1] : vector<8x8xf32> to vector<8xf32>
    %39 = vector.shape_cast %38 : vector<8xf32> to vector<8x1xf32>
    %40 = vector.broadcast %39 : vector<8x1xf32> to vector<8x8xf32>
    %41 = arith.subf %37, %40 : vector<8x8xf32>
    %42 = math.exp %41 : vector<8x8xf32>
    %cst_27 = arith.constant dense<0.000000e+00> : vector<8xf32>
    %43 = vector.multi_reduction <add>, %42, %cst_27 [1] : vector<8x8xf32> to vector<8xf32>
    %44 = vector.shape_cast %43 : vector<8xf32> to vector<8x1xf32>
    %45 = tpu.reciprocal %44 {approx = true} : vector<8x1xf32> -> vector<8x1xf32>
    %46 = vector.broadcast %45 : vector<8x1xf32> to vector<8x8xf32>
    %47 = arith.mulf %42, %46 : vector<8x8xf32>
    %cst_28 = arith.constant dense<0.000000e+00> : vector<8x8xf32>
    %48 = tpu.matmul %47, %36, %cst_28 {dimension_numbers = #tpu.dot_dimension_numbers<[1], [0], [0], [1], [0, 0, 1, 1], [], []>} : vector<8x8xf32>, vector<8x8xf32>, vector<8x8xf32> -> vector<8x8xf32>
    %49 = vector.extract_strided_slice %9 {offsets = [8, 0], sizes = [8, 32], strides = [1, 1]} : vector<32x32xf32> to vector<8x32xf32>
    %cst_29 = arith.constant dense<0.000000e+00> : vector<8x32xf32>
    %50 = tpu.matmul %48, %49, %cst_29 {dimension_numbers = #tpu.dot_dimension_numbers<[1], [0], [0], [1], [0, 0, 1, 1], [], []>} : vector<8x8xf32>, vector<8x32xf32>, vector<8x32xf32> -> vector<8x32xf32>
    %51 = arith.addf %33, %50 : vector<8x32xf32>
    %52 = vector.extract_strided_slice %12 {offsets = [0, 16], sizes = [8, 8], strides = [1, 1]} : vector<8x32xf32> to vector<8x8xf32>
    %53 = vector.extract_strided_slice %13 {offsets = [0, 16], sizes = [8, 8], strides = [1, 1]} : vector<8x32xf32> to vector<8x8xf32>
    %54 = vector.extract_strided_slice %14 {offsets = [0, 16], sizes = [8, 8], strides = [1, 1]} : vector<8x32xf32> to vector<8x8xf32>
    %cst_30 = arith.constant dense<0.000000e+00> : vector<8x8xf32>
    %55 = tpu.matmul %52, %53, %cst_30 {dimension_numbers = #tpu.dot_dimension_numbers<[1], [1], [0], [0], [0, 0, 1, 0], [], []>} : vector<8x8xf32>, vector<8x8xf32>, vector<8x8xf32> -> vector<8x8xf32>
    %cst_31 = arith.constant dense<0xFF800000> : vector<8xf32>
    %56 = vector.multi_reduction <maximumf>, %55, %cst_31 [1] : vector<8x8xf32> to vector<8xf32>
    %57 = vector.shape_cast %56 : vector<8xf32> to vector<8x1xf32>
    %58 = vector.broadcast %57 : vector<8x1xf32> to vector<8x8xf32>
    %59 = arith.subf %55, %58 : vector<8x8xf32>
    %60 = math.exp %59 : vector<8x8xf32>
    %cst_32 = arith.constant dense<0.000000e+00> : vector<8xf32>
    %61 = vector.multi_reduction <add>, %60, %cst_32 [1] : vector<8x8xf32> to vector<8xf32>
    %62 = vector.shape_cast %61 : vector<8xf32> to vector<8x1xf32>
    %63 = tpu.reciprocal %62 {approx = true} : vector<8x1xf32> -> vector<8x1xf32>
    %64 = vector.broadcast %63 : vector<8x1xf32> to vector<8x8xf32>
    %65 = arith.mulf %60, %64 : vector<8x8xf32>
    %cst_33 = arith.constant dense<0.000000e+00> : vector<8x8xf32>
    %66 = tpu.matmul %65, %54, %cst_33 {dimension_numbers = #tpu.dot_dimension_numbers<[1], [0], [0], [1], [0, 0, 1, 1], [], []>} : vector<8x8xf32>, vector<8x8xf32>, vector<8x8xf32> -> vector<8x8xf32>
    %67 = vector.extract_strided_slice %9 {offsets = [16, 0], sizes = [8, 32], strides = [1, 1]} : vector<32x32xf32> to vector<8x32xf32>
    %cst_34 = arith.constant dense<0.000000e+00> : vector<8x32xf32>
    %68 = tpu.matmul %66, %67, %cst_34 {dimension_numbers = #tpu.dot_dimension_numbers<[1], [0], [0], [1], [0, 0, 1, 1], [], []>} : vector<8x8xf32>, vector<8x32xf32>, vector<8x32xf32> -> vector<8x32xf32>
    %69 = arith.addf %51, %68 : vector<8x32xf32>
    %70 = vector.extract_strided_slice %12 {offsets = [0, 24], sizes = [8, 8], strides = [1, 1]} : vector<8x32xf32> to vector<8x8xf32>
    %71 = vector.extract_strided_slice %13 {offsets = [0, 24], sizes = [8, 8], strides = [1, 1]} : vector<8x32xf32> to vector<8x8xf32>
    %72 = vector.extract_strided_slice %14 {offsets = [0, 24], sizes = [8, 8], strides = [1, 1]} : vector<8x32xf32> to vector<8x8xf32>
    %cst_35 = arith.constant dense<0.000000e+00> : vector<8x8xf32>
    %73 = tpu.matmul %70, %71, %cst_35 {dimension_numbers = #tpu.dot_dimension_numbers<[1], [1], [0], [0], [0, 0, 1, 0], [], []>} : vector<8x8xf32>, vector<8x8xf32>, vector<8x8xf32> -> vector<8x8xf32>
    %cst_36 = arith.constant dense<0xFF800000> : vector<8xf32>
    %74 = vector.multi_reduction <maximumf>, %73, %cst_36 [1] : vector<8x8xf32> to vector<8xf32>
    %75 = vector.shape_cast %74 : vector<8xf32> to vector<8x1xf32>
    %76 = vector.broadcast %75 : vector<8x1xf32> to vector<8x8xf32>
    %77 = arith.subf %73, %76 : vector<8x8xf32>
    %78 = math.exp %77 : vector<8x8xf32>
    %cst_37 = arith.constant dense<0.000000e+00> : vector<8xf32>
    %79 = vector.multi_reduction <add>, %78, %cst_37 [1] : vector<8x8xf32> to vector<8xf32>
    %80 = vector.shape_cast %79 : vector<8xf32> to vector<8x1xf32>
    %81 = tpu.reciprocal %80 {approx = true} : vector<8x1xf32> -> vector<8x1xf32>
    %82 = vector.broadcast %81 : vector<8x1xf32> to vector<8x8xf32>
    %83 = arith.mulf %78, %82 : vector<8x8xf32>
    %cst_38 = arith.constant dense<0.000000e+00> : vector<8x8xf32>
    %84 = tpu.matmul %83, %72, %cst_38 {dimension_numbers = #tpu.dot_dimension_numbers<[1], [0], [0], [1], [0, 0, 1, 1], [], []>} : vector<8x8xf32>, vector<8x8xf32>, vector<8x8xf32> -> vector<8x8xf32>
    %85 = vector.extract_strided_slice %9 {offsets = [24, 0], sizes = [8, 32], strides = [1, 1]} : vector<32x32xf32> to vector<8x32xf32>
    %cst_39 = arith.constant dense<0.000000e+00> : vector<8x32xf32>
    %86 = tpu.matmul %84, %85, %cst_39 {dimension_numbers = #tpu.dot_dimension_numbers<[1], [0], [0], [1], [0, 0, 1, 1], [], []>} : vector<8x8xf32>, vector<8x32xf32>, vector<8x32xf32> -> vector<8x32xf32>
    %87 = arith.addf %69, %86 : vector<8x32xf32>
    %c0_40 = arith.constant 0 : index
    %c0_41 = arith.constant 0 : index
    %c0_42 = arith.constant 0 : index
    %88 = vector.load %arg9[%c0_40, %c0_41, %c0_42] : memref<1x8x32xf32, #tpu.memory_space<vmem>>, vector<1x8x32xf32>
    %89 = vector.shape_cast %88 : vector<1x8x32xf32> to vector<8x32xf32>
    %90 = vector.shape_cast %87 : vector<8x32xf32> to vector<1x8x32xf32>
    tpu.vector_store %arg9[%c0_40, %c0_41, %c0_42], %90 {strides = array<i32>} : memref<1x8x32xf32, #tpu.memory_space<vmem>>, vector<1x8x32xf32>,
    return
  }
  func.func @transform_0(%arg0: i32, %arg1: i32) -> (i32, i32, i32) {
    %c0_i32 = arith.constant 0 : i32
    %c0_i32_0 = arith.constant 0 : i32
    return %arg0, %arg1, %c0_i32 : i32, i32, i32
  }
  func.func @transform_1(%arg0: i32, %arg1: i32) -> (i32, i32, i32) {
    %c0_i32 = arith.constant 0 : i32
    %c0_i32_0 = arith.constant 0 : i32
    %c0_i32_1 = arith.constant 0 : i32
    return %arg0, %c0_i32, %c0_i32_0 : i32, i32, i32
  }
  func.func @transform_2(%arg0: i32, %arg1: i32) -> (i32, i32, i32) {
    %c0_i32 = arith.constant 0 : i32
    %c0_i32_0 = arith.constant 0 : i32
    %c0_i32_1 = arith.constant 0 : i32
    return %arg0, %c0_i32, %c0_i32_0 : i32, i32, i32
  }
  func.func @transform_3(%arg0: i32, %arg1: i32) -> (i32, i32) {
    %c0_i32 = arith.constant 0 : i32
    %c0_i32_0 = arith.constant 0 : i32
    %c0_i32_1 = arith.constant 0 : i32
    return %c0_i32, %c0_i32_0 : i32, i32
  }
  func.func @transform_4(%arg0: i32, %arg1: i32) -> (i32, i32) {
    %c0_i32 = arith.constant 0 : i32
    %c0_i32_0 = arith.constant 0 : i32
    %c0_i32_1 = arith.constant 0 : i32
    return %c0_i32, %c0_i32_0 : i32, i32
  }
  func.func @transform_5(%arg0: i32, %arg1: i32) -> (i32, i32) {
    %c0_i32 = arith.constant 0 : i32
    %c0_i32_0 = arith.constant 0 : i32
    %c0_i32_1 = arith.constant 0 : i32
    return %c0_i32, %c0_i32_0 : i32, i32
  }
  func.func @transform_6(%arg0: i32, %arg1: i32) -> (i32, i32) {
    %c0_i32 = arith.constant 0 : i32
    %c0_i32_0 = arith.constant 0 : i32
    %c0_i32_1 = arith.constant 0 : i32
    return %c0_i32, %c0_i32_0 : i32, i32
  }
  func.func @transform_7(%arg0: i32, %arg1: i32) -> (i32, i32, i32) {
    %c0_i32 = arith.constant 0 : i32
    %c0_i32_0 = arith.constant 0 : i32
    return %arg0, %arg1, %c0_i32 : i32, i32, i32
  }
}

</mosaic_0001>

<bundles_post_ra>
// kernel: tpu_custom_call.1
= control target key start
LH: loop header
LB: loop body
LE: loop exit
PB: predicated region body
PF: predicated region fallthrough
CT: control target
= control target key end

     0   :  { %s2983_s0 = inlined_call_operand.hbm [shape: f32[2,8,32], index: 0, kind: input, shape index: {}]   ;;  %s2984_s1 = inlined_call_operand.hbm [shape: f32[2,8,32], index: 1, kind: input, shape index: {}]   ;;  %s2985_s2 = inlined_call_operand.hbm [shape: f32[2,8,32], index: 2, kind: input, shape index: {}]   ;;  %s2986_s3 = inlined_call_operand.hbm [shape: f32[32,32], index: 3, kind: input, shape index: {}]   ;;  %s2987_s4 = inlined_call_operand.hbm [shape: f32[32,32], index: 4, kind: input, shape index: {}]   ;;  %s2988_s5 = inlined_call_operand.hbm [shape: f32[32,32], index: 5, kind: input, shape index: {}]   ;;  %s2989_s6 = inlined_call_operand.hbm [shape: f32[32,32], index: 6, kind: input, shape index: {}]   ;;  %s2990_s7 = inlined_call_operand.hbm [shape: f32[2,8,32], index: 7, kind: output, shape index: {}]  }
   0x1   :  { %3015 = sst [smem:[#allocation26_spill]] %s2984_s1 }
   0x2   :  { %3016 = sst [smem:[#allocation27_spill]] %s2986_s3 }
   0x3   :  { %3017 = sst [smem:[#allocation28_spill]] %s2988_s5 }
   0x4   :  { %3018 = sst [smem:[#allocation29_spill]] %s2990_s7 }
   0x5   :  { %12 = vsyncpa [#allocation3], 0 }
   0x6   :  { %14 = vsyncpa [#allocation3 + $0x1], 0 }
   0x7   :  { %15 = vsyncpa [#allocation6], 0 }
   0x8   :  { %17 = vsyncpa [#allocation6 + $0x1], 0 }
   0x9   :  { %18 = vsyncpa [#allocation9], 0 }
   0xa   :  { %19 = vsyncpa [#allocation12], 0 }
   0xb   :  { %20 = vsyncpa [#allocation4], 0 }
   0xc   :  { %22 = vsyncpa [#allocation4 + $0x1], 0  ;;  %s2501_s24 = smov 0   ;;  %s2503_s25 = smov 0  }
   0xd   :  { %s2505_s26 = smov 0   ;;  %s2507_s27 = smov 0  }
   0xe   :  { %s2509_s28 = smov 0   ;;  %s2511_s29 = smov 0  }
   0xf LB: > { %3019 = sst [smem:[#allocation20_spill]] %s2423_s24  ;;  %s2532_s30 = sadd.s32 4294967295, %s2443_s29   ;;  %s2443_s29 = sphi %s2511_s29, %s28_s29   ;;  %s2439_s28 = sphi %s2509_s28, %s3060_s28   ;;  %s2435_s27 = sphi %s2507_s27, %s3059_s27   ;;  %s2431_s26 = sphi %s2505_s26, %s3063_s26   ;;  %s2427_s25 = sphi %s2503_s25, %s3062_s25   ;;  %s2423_s24 = sphi %s2501_s24, %s3061_s24  }
  0x10   : > { %3020 = sst [smem:[#allocation21_spill]] %s2439_s28  ;;  %p1810_p0 = scmp.ge.s32.totalorder %s2443_s29, 1 }
  0x11   : > { %3021 = sst [smem:[#allocation22_spill]] %s2443_s29  ;;  %p3000_p1 = scmp.eq.s32.totalorder %s2532_s30, 0 }
  0x12   : > { %p237_p2 = scmp.lt.s32.totalorder %s2443_s29, 3  ;;  %s2445_s9 = smov [#allocation8]  }
  0x13   : > { %s249_s10 = sshll.u32 %s2445_s9, 4  ;;  %s2446_s12 = smov [#allocation11]   ;;  %s2541_s10 = int_to_ptr.vmem [resolvable:$true] %s249_s10 }
  0x14   : > { %p2537_p3 = pnand %p1810_p0, %p237_p2  ;;  %s275_s13 = sshll.u32 %s2446_s12, 4  ;;  %s2552_s13 = int_to_ptr.vmem [resolvable:$true] %s275_s13 }
  0x15   : > { %s3024_s3 = sld [smem:[#allocation27_spill]] }
  0x16   : > { %s3022_s8 = scalar_select %p2537_p3, 1, 0 }
  0x17   : > { %p2034_p4 = pneg %p2537_p3 }
  0x19   : > { %p2548_p6 = pnand %p2034_p4, %p3000_p1 }
  0x1b   : > { %s3023_s11 = scalar_select %p2548_p6, 1, 0 }
  0x1c   : > { %s2147_s16 = scalar_lea.hbm %s3024_s3, 512  ;;  %p2562_p8 = pneg %p2548_p6 }
  0x1d   : > { %p2148_p7 = scmp.ne.s32.totalorder %s3024_s3, %s2147_s16  ;;  %p2154_p11 = scmp.lt.u32.totalorder %s2147_s16, %s3024_s3 }
  0x1e   : > { %s3025_s19 = scalar_select %p2562_p8, 1, 0 }
  0x1f   : > { %p2150_p9 = pnand %p2562_p8, %p2148_p7 }
  0x21   : > { %p2151_p10 = pneg %p2150_p9 }
  0x23   : > { %p2156_p12 = pnand %p2154_p11, %p2151_p10 }
  0x25   : > { %2159 = shalt.err (!%p2156_p12)
}
  0x26   : > { %s2160_s22 = scalar_lea.vmem %s2541_s10, 512  ;;  %p2168_p4 = scmp.lt.s32.totalorder %s2541_s10, %s2541_s10 }
  0x27   : > { %p2161_p13 = scmp.ne.s32.totalorder %s2541_s10, %s2160_s22  ;;  %p2169_p5 = scmp.lt.s32.totalorder %s2160_s22, %s2160_s22 }
  0x29   : > { %p2163_p0 = pnand %p2161_p13, %p2562_p8  ;;  %p2170_p7 = por %p2169_p5, %p2168_p4 }
  0x2b   : > { %p2164_p2 = pneg %p2163_p0 }
  0x2d   : > { %p2171_p9 = pnand %p2170_p7, %p2164_p2 }
  0x2f   : > { %2174 = shalt.err (!%p2171_p9)
}
  0x30   : > { %s2991_s23 = smov 128   ;;  %s2993_s9 = smov 8  }
  0x31   : > { %2037 = dma.hbm_to_vmem [thread:$0]  (!%p2548_p6), %s3024_s3, 512, %s2541_s10, [#allocation9], %s2991_s23, %s2991_s23, %s2993_s9  }
  0x32   : > { %s3026_s5 = sld [smem:[#allocation28_spill]] }
  0x38   : > { %s2175_s17 = scalar_lea.hbm %s3026_s5, 512 }
  0x39   : > { %p2176_p5 = scmp.ne.s32.totalorder %s3026_s5, %s2175_s17  ;;  %p2182_p12 = scmp.lt.u32.totalorder %s2175_s17, %s3026_s5 }
  0x3b   : > { %p2178_p10 = pnand %p2176_p5, %p2562_p8 }
  0x3d   : > { %p2179_p11 = pneg %p2178_p10 }
  0x3f   : > { %p2184_p13 = pnand %p2182_p12, %p2179_p11 }
  0x41   : > { %2187 = shalt.err (!%p2184_p13)
}
  0x42   : > { %s2188_s10 = scalar_lea.vmem %s2552_s13, 512  ;;  %p2196_p7 = scmp.lt.s32.totalorder %s2552_s13, %s2552_s13 }
  0x43   : > { %p2189_p0 = scmp.ne.s32.totalorder %s2552_s13, %s2188_s10  ;;  %p2197_p9 = scmp.lt.s32.totalorder %s2188_s10, %s2188_s10 }
  0x45   : > { %p2191_p2 = pnand %p2189_p0, %p2562_p8  ;;  %p2198_p5 = por %p2197_p9, %p2196_p7 }
  0x47   : > { %p2192_p4 = pneg %p2191_p2 }
  0x49   : > { %p2199_p10 = pnand %p2198_p5, %p2192_p4 }
  0x4b   : > { %2202 = shalt.err (!%p2199_p10)
}
  0x4c   : > { %2043 = dma.hbm_to_vmem [thread:$0]  (!%p2548_p6), %s3026_s5, 512, %s2552_s13, [#allocation12], %s2991_s23, %s2991_s23, %s2993_s9  }
  0x4d   : > { %s1809_s15 = sadd.s32 4294967294, %s2443_s29   ;;  %s40_s16 = sadd.s32 1, %s2439_s28 }
  0x4e   : > { %p42_p11 = scmp.ge.s32.totalorder %s40_s16, 2  ;;  %s49_s17 = sadd.s32 1, %s2431_s26 }
  0x4f   : > { %p56_p12 = scmp.ne.s32.totalorder %s2431_s26, %s2427_s25  ;;  %p57_p13 = scmp.eq.s32.totalorder %s2443_s29, 0 }
  0x50   : > { %s3065_s16 = smov (%p42_p11, %s40_s16), 0  ;;  %p62_p2 = scmp.ne.s32.totalorder %s2427_s25, %s2423_s24 }
  0x51   : > { %3027 = sst [smem:[#allocation23_spill]] %s3065_s16  ;;  %p2620_p0 = por %p57_p13, %p56_p12 }
  0x52   : > { %s44_s13 = ssub.s32 %s2439_s28, %s3065_s16  ;;  %p224_p4 = scmp.eq.s32.totalorder %s2532_s30, 1 }
  0x53   : > { %p47_p7 = scmp.eq.s32.totalorder %s44_s13, 0  ;;  %p2631_p9 = por %p3000_p1, %p62_p2 }
  0x54   : > { %p2635_p5 = por %p224_p4, %p56_p12  ;;  %p230_p10 = scmp.eq.s32.totalorder %s1809_s15, 1 }
  0x55   : > { %s3029_s20 = scalar_select %p2631_p9, 1, 0 }
  0x56   : > { %s3030_s21 = scalar_select %p2635_p5, 1, 0 }
  0x57   : > { %s2640_s22 = scalar_select %p47_p7, %s2431_s26, %s49_s17  }
  0x58   : > { %p2642_p11 = por %p230_p10, %p62_p2  ;;  %p2065_p13 = scmp.lt.s32.totalorder %s2443_s29, 2 }
  0x59   : > { %3031 = sst [smem:[#allocation24_spill]] %s2640_s22  ;;  %s2995_s12 = sand.u32 1, %s2431_s26  }
  0x5a   : > { %s3032_s10 = scalar_select %p2642_p11, 1, 0 }
  0x5b   : > { %s2649_s14 = sshll.u32 %s2439_s28, 7  ;;  %s2653_s13 = sshll.u32 %s2995_s12, 3 }
  0x5c   : > { %3033 = sst [smem:[#allocation25_spill]] %s3032_s10  ;;  %p2657_p12 = pnand %p2065_p13, %p2620_p0 }
  0x5d   : > { %s321_s15 = sand.u32 1, %s2443_s29   ;;  %s3035_s1 = sld [smem:[#allocation26_spill]] }
  0x5e   : > { %s3034_s23 = scalar_select %p2657_p12, 1, 0 }
  0x5f   : > { %s325_s5 = scalar_lea.vmem [#allocation5], %s2653_s13  ;;  %s2671_s18 = scalar_lea.sflag [#allocation6], %s321_s15 }
  0x60   : > { %s332_s12 = sshll.u32 %s325_s5, 4  ;;  %p2677_p2 = pneg %p2657_p12  ;;  %s2669_s12 = int_to_ptr.vmem [resolvable:$true] %s332_s12 }
  0x62   : > { %s3036_s28 = scalar_select %p2677_p2, 1, 0 }
  0x63   : > { %s2666_s3 = scalar_lea.hbm %s3035_s1, %s2649_s14  ;;  %s2208_s22 = scalar_lea.hbm %s3035_s1, 256 }
  0x64   : > { %s2203_s16 = scalar_lea.hbm %s2666_s3, 128  ;;  %p2209_p10 = scmp.lt.u32.totalorder %s2666_s3, %s3035_s1 }
  0x65   : > { %p2204_p0 = scmp.ne.s32.totalorder %s2666_s3, %s2203_s16  ;;  %p2210_p13 = scmp.lt.u32.totalorder %s2208_s22, %s2203_s16 }
  0x66   : > { %p2212_p11 = scmp.lt.u32.totalorder %s2203_s16, %s2666_s3 }
  0x67   : > { %p2206_p4 = pnand %p2677_p2, %p2204_p0  ;;  %p2211_p1 = por %p2210_p13, %p2209_p10 }
  0x69   : > { %p2207_p7 = pneg %p2206_p4  ;;  %p2213_p5 = por %p2212_p11, %p2211_p1 }
  0x6b   : > { %p2214_p9 = pnand %p2213_p5, %p2207_p7 }
  0x6d   : > { %2217 = shalt.err (!%p2214_p9)
}
  0x6e   : > { %s2218_s15 = scalar_lea.vmem %s2669_s12, 128  ;;  %s2449_s9 = smov [#allocation5]  }
  0x6f   : > { %p2219_p0 = scmp.ne.s32.totalorder %s2669_s12, %s2218_s15  ;;  %s2223_s17 = sshll.u32 %s2449_s9, 4  ;;  %s2224_s17 = int_to_ptr.vmem [resolvable:$false] %s2223_s17 }
  0x70   : > { %s2225_s29 = scalar_lea.vmem %s2224_s17, 256  ;;  %p2226_p6 = scmp.lt.s32.totalorder %s2669_s12, %s2224_s17 }
  0x71   : > { %p2221_p4 = pnand %p2219_p0, %p2677_p2  ;;  %p2227_p8 = scmp.lt.s32.totalorder %s2225_s29, %s2218_s15 }
  0x73   : > { %p2222_p3 = pneg %p2221_p4  ;;  %p2228_p10 = por %p2227_p8, %p2226_p6 }
  0x75   : > { %p2229_p13 = pnand %p2228_p10, %p2222_p3 }
  0x77   : > { %2232 = shalt.err (!%p2229_p13)
}
  0x78   : > { %2053 = dma.hbm_to_vmem [thread:$0]  (!%p2657_p12), %s2666_s3, 128, %s2669_s12, %s2671_s18  }
  0x79   : > { %s2450_s16 = smov [#allocation10]   ;;  %s2451_s5 = smov [#allocation13]  }
  0x7a   : > { %s262_s22 = sshll.u32 %s2450_s16, 4  ;;  %s288_s1 = sshll.u32 %s2451_s5, 4  ;;  %s263_s22 = int_to_ptr.vmem [resolvable:$true] %s262_s22  ;;  %s289_s1 = int_to_ptr.vmem [resolvable:$true] %s288_s1 }
  0x7b   : > { %s2233_s17 = scalar_lea.hbm %s2987_s4, 512  ;;  %p3037_p3 = scmp.ne.s32.totalorder %s3025_s19, 0 }
  0x7c   : > { %p2234_p1 = scmp.ne.s32.totalorder %s2987_s4, %s2233_s17  ;;  %p2240_p9 = scmp.lt.u32.totalorder %s2233_s17, %s2987_s4 }
  0x7e   : > { %p2236_p6 = pnand %p2234_p1, %p3037_p3 }
  0x80   : > { %p2237_p8 = pneg %p2236_p6 }
  0x82   : > { %p2242_p5 = pnand %p2240_p9, %p2237_p8 }
  0x84   : > { %2245 = shalt.err (!%p2242_p5)
}
  0x85   : > { %s2246_s3 = scalar_lea.vmem %s263_s22, 512  ;;  %p2254_p4 = scmp.lt.s32.totalorder %s263_s22, %s263_s22 }
  0x86   : > { %p2247_p11 = scmp.ne.s32.totalorder %s263_s22, %s2246_s3  ;;  %p2255_p10 = scmp.lt.s32.totalorder %s2246_s3, %s2246_s3 }
  0x88   : > { %p2249_p7 = pnand %p2247_p11, %p3037_p3  ;;  %p2256_p13 = por %p2255_p10, %p2254_p4 }
  0x8a   : > { %p2250_p0 = pneg %p2249_p7 }
  0x8c   : > { %p2257_p12 = pnand %p2256_p13, %p2250_p0 }
  0x8e   : > { %2260 = shalt.err (!%p2257_p12)
}
  0x8f   : > { %p3038_p1 = scmp.ne.s32.totalorder %s3023_s11, 0  ;;  %s3039_s10 = smov 8  }
  0x90   : > { %s3040_s12 = smov 128   ;;  %s2261_s9 = scalar_lea.hbm %s2989_s6, 512 }
  0x91   : > { %2040 = dma.hbm_to_vmem [thread:$0]  (!%p3038_p1), %s2987_s4, 512, %s263_s22, [#allocation9], %s3040_s12, %s3040_s12, %s3039_s10  }
  0x92   : > { %p2262_p6 = scmp.ne.s32.totalorder %s2989_s6, %s2261_s9  ;;  %p2268_p9 = scmp.lt.u32.totalorder %s2261_s9, %s2989_s6 }
  0x94   : > { %p2264_p12 = pnand %p2262_p6, %p3037_p3 }
  0x96   : > { %p2265_p8 = pneg %p2264_p12 }
  0x98   : > { %p2270_p5 = pnand %p2268_p9, %p2265_p8 }
  0x9a   : > { %2273 = shalt.err (!%p2270_p5)
}
  0x9b   : > { %s2274_s7 = scalar_lea.vmem %s289_s1, 512  ;;  %p2282_p4 = scmp.lt.s32.totalorder %s289_s1, %s289_s1 }
  0x9c   : > { %p2275_p11 = scmp.ne.s32.totalorder %s289_s1, %s2274_s7  ;;  %p2283_p10 = scmp.lt.s32.totalorder %s2274_s7, %s2274_s7 }
  0x9e   : > { %p2277_p7 = pnand %p2275_p11, %p3037_p3  ;;  %p2284_p13 = por %p2283_p10, %p2282_p4 }
  0xa0   : > { %p2278_p0 = pneg %p2277_p7 }
  0xa2   : > { %p2285_p2 = pnand %p2284_p13, %p2278_p0 }
  0xa4   : > { %2288 = shalt.err (!%p2285_p2)
}
  0xa5   : > { %2046 = dma.hbm_to_vmem [thread:$0]  (!%p3038_p1), %s2989_s6, 512, %s289_s1, [#allocation12], %s3040_s12, %s3040_s12, %s3039_s10  }
  0xa6   : > { %s2747_s5 = scalar_lea.hbm %s2983_s0, %s2649_s14  ;;  %s306_s11 = scalar_lea.vmem [#allocation2], %s2653_s13 }
  0xa7   : > { %s314_s9 = sshll.u32 %s306_s11, 4  ;;  %s2756_s29 = scalar_lea.hbm %s2985_s2, %s2649_s14  ;;  %s2750_s9 = int_to_ptr.vmem [resolvable:$true] %s314_s9 }
  0xa8   : > { %s3041_s3 = sand.u32 1, %s2431_s26   ;;  %s2289_s10 = scalar_lea.hbm %s2747_s5, 128 }
  0xa9   : > { %s303_s1 = scalar_lea.sflag [#allocation3], %s3041_s3  ;;  %p2290_p2 = scmp.ne.s32.totalorder %s2747_s5, %s2289_s10 }
  0xaa   : > { %p3042_p3 = scmp.ne.s32.totalorder %s3036_s28, 0  ;;  %s2294_s22 = scalar_lea.hbm %s2983_s0, 256 }
  0xab   : > { %p2295_p12 = scmp.lt.u32.totalorder %s2747_s5, %s2983_s0  ;;  %p2296_p8 = scmp.lt.u32.totalorder %s2294_s22, %s2289_s10 }
  0xac   : > { %p2292_p1 = pnand %p2290_p2, %p3042_p3  ;;  %p2298_p5 = scmp.lt.u32.totalorder %s2289_s10, %s2747_s5 }
  0xad   : > { %p2297_p9 = por %p2296_p8, %p2295_p12 }
  0xae   : > { %p2293_p6 = pneg %p2292_p1 }
  0xaf   : > { %p2299_p11 = por %p2298_p5, %p2297_p9 }
  0xb1   : > { %p2300_p7 = pnand %p2299_p11, %p2293_p6 }
  0xb3   : > { %2303 = shalt.err (!%p2300_p7)
}
  0xb4   : > { %s2304_s14 = scalar_lea.vmem %s2750_s9, 128  ;;  %s2452_s16 = smov [#allocation2]  }
  0xb5   : > { %p2305_p0 = scmp.ne.s32.totalorder %s2750_s9, %s2304_s14  ;;  %s2309_s11 = sshll.u32 %s2452_s16, 4  ;;  %s2310_s11 = int_to_ptr.vmem [resolvable:$false] %s2309_s11 }
  0xb6   : > { %s2311_s17 = scalar_lea.vmem %s2310_s11, 256  ;;  %p2312_p13 = scmp.lt.s32.totalorder %s2750_s9, %s2310_s11 }
  0xb7   : > { %p2307_p4 = pnand %p2305_p0, %p3042_p3  ;;  %p2313_p2 = scmp.lt.s32.totalorder %s2311_s17, %s2304_s14 }
  0xb9   : > { %p2308_p10 = pneg %p2307_p4  ;;  %p2314_p1 = por %p2313_p2, %p2312_p13 }
  0xbb   : > { %p2315_p12 = pnand %p2314_p1, %p2308_p10 }
  0xbd   : > { %2318 = shalt.err (!%p2315_p12)
}
  0xbe   : > { %p3043_p6 = scmp.ne.s32.totalorder %s3034_s23, 0  ;;  %s343_s15 = scalar_lea.vmem [#allocation7], %s2653_s13 }
  0xbf   : > { %s350_s3 = sshll.u32 %s343_s15, 4  ;;  %s2319_s10 = scalar_lea.hbm %s2756_s29, 128  ;;  %s351_s3 = int_to_ptr.vmem [resolvable:$true] %s350_s3 }
  0xc0   : > { %2050 = dma.hbm_to_vmem [thread:$0]  (!%p3043_p6), %s2747_s5, 128, %s2750_s9, %s303_s1  }
  0xc1   : > { %p2320_p8 = scmp.ne.s32.totalorder %s2756_s29, %s2319_s10  ;;  %s2324_s22 = scalar_lea.hbm %s2985_s2, 256 }
  0xc2   : > { %p2325_p11 = scmp.lt.u32.totalorder %s2756_s29, %s2985_s2  ;;  %p2326_p7 = scmp.lt.u32.totalorder %s2324_s22, %s2319_s10 }
  0xc3   : > { %p2322_p9 = pnand %p2320_p8, %p3042_p3  ;;  %p2328_p4 = scmp.lt.u32.totalorder %s2319_s10, %s2756_s29 }
  0xc4   : > { %p2327_p0 = por %p2326_p7, %p2325_p11 }
  0xc5   : > { %p2323_p5 = pneg %p2322_p9 }
  0xc6   : > { %p2329_p10 = por %p2328_p4, %p2327_p0 }
  0xc8   : > { %p2330_p13 = pnand %p2329_p10, %p2323_p5 }
  0xca   : > { %2333 = shalt.err (!%p2330_p13)
}
  0xcb   : > { %s2334_s13 = scalar_lea.vmem %s351_s3, 128  ;;  %s2453_s5 = smov [#allocation7]  }
  0xcc   : > { %p2335_p2 = scmp.ne.s32.totalorder %s351_s3, %s2334_s13  ;;  %s2339_s9 = sshll.u32 %s2453_s5, 4  ;;  %s2340_s9 = int_to_ptr.vmem [resolvable:$false] %s2339_s9 }
  0xcd   : > { %s2341_s1 = scalar_lea.vmem %s2340_s9, 256  ;;  %p2342_p8 = scmp.lt.s32.totalorder %s351_s3, %s2340_s9 }
  0xce   : > { %p2337_p1 = pnand %p2335_p2, %p3042_p3  ;;  %p2343_p9 = scmp.lt.s32.totalorder %s2341_s1, %s2334_s13 }
  0xd0   : > { %p2338_p12 = pneg %p2337_p1  ;;  %p2344_p6 = por %p2343_p9, %p2342_p8 }
  0xd2   : > { %p2345_p7 = pnand %p2344_p6, %p2338_p12 }
  0xd4   : > { %2348 = shalt.err (!%p2345_p7)
}
  0xd5   : > { %p3044_p11 = scmp.ne.s32.totalorder %s3034_s23, 0  ;;  %p3045_p5 = scmp.ne.s32.totalorder %s3022_s8, 0 }
  0xd6   : > { %s2803_s28 = sand.u32 (!%p3045_p5), 1, %s2427_s25   ;;  %p3046_p3 = scmp.ne.s32.totalorder (!%p3045_p5), %s3029_s20, 0 }
  0xd7   : > { %2056 = dma.hbm_to_vmem [thread:$0]  (!%p3044_p11), %s2756_s29, 128, %s351_s3, %s2671_s18  }
  0xd8   : > { %359 = sbr.rel (%p3045_p5) target bundleno = 3014 (0xbc6), region = 48  ;;  %s2806_s14 = sshll.u32 (!%p3045_p5), %s2803_s28, 3 }
  0xd9   : > { %s362_s16 = scalar_lea.sflag (!%p3045_p5), [#allocation3], %s2803_s28  ;;  %s365_s11 = scalar_lea.vmem (!%p3045_p5), [#allocation2], %s2806_s14 }
  0xdf   : > { %2402 = dma.done.wait (%p3046_p3), %s362_s16, 128  }
  0xe0   : > { %2404 = vsyncadd (%p3046_p3), %s362_s16, 4294967168  ;;  %s370_s8 = sand.u32 1, %s2532_s30   ;;  %s374_s18 = scalar_lea.vmem [#allocation5], %s2806_s14 }
  0xe1   : > { %s371_s23 = scalar_lea.sflag [#allocation6], %s370_s8 }
  0xe2   : > { %2406 = dma.done.wait (%p3046_p3), %s371_s23, 256  }
  0xe3   : > { %2408 = vsyncadd (%p3046_p3), %s371_s23, 4294967040  ;;  %s383_s29 = scalar_lea.vmem [#allocation7], %s2806_s14  ;;  %p3047_p6 = scmp.eq.s32.totalorder %s2532_s30, 0 }
  0xe5   : > { %2410 = dma.done.wait (%p3047_p6), [#allocation9], 1024   ;;  %p3048_p0 = pmov %p3047_p6 }
  0xe7   : > { %2412 = vsyncadd (%p3048_p0), [#allocation9], 4294966272  ;;  %p3049_p4 = pmov %p3048_p0 }
  0xe8   : > { %p3050_p10 = pmov %p3048_p0 }
  0xe9   : > { %2414 = dma.done.wait (%p3049_p4), [#allocation12], 1024  }
  0xea   : > { %2416 = vsyncadd (%p3050_p10), [#allocation12], 4294966272  ;;  %v2454_v0 = vmov 0.0|0.0   ;;  %vm2455_vm0 = vmmov 0   ;;  %v2456_v1 = vmov 0.0   ;;  %v447_v2 = vld [vmem:[#allocation10] sm:$0xff] }
  0xeb   : > { %1992 = vmatprep.subr.bf16.mxu1 %v2454_v0  ;;  %1986 = vmatprep.subr.bf16.mxu0 %v2454_v0  ;;  %v448_v3 = vld [vmem:[#allocation10 + $0x8] sm:$0xff]  ;;  %v443_v4 = vld [vmem:[#allocation8] sm:$0xff]  ;;  %v449_v7 = vld [vmem:[#allocation10 + $0x10] sm:$0xff]  ;;  %vm459_vm1 = vcmask 261120   ;;  %vm680_vm2 = vcmask 64512   ;;  %s2457_s30 = smov 120  }
  0xec   : > { %1912 = vmatprep.mubr.msk.f32.mxu1 %vm2455_vm0, %v2456_v1  ;;  %1901 = vmatprep.mubr.msk.f32.mxu0 %vm2455_vm0, %v2456_v1  ;;  %v1993_v5 = vpack.c.bf16 %v448_v3, %v447_v2  ;;  %v444_v6 = vld [vmem:[#allocation8 + $0x8] sm:$0xff]  ;;  %v450_v8 = vld [vmem:[#allocation10 + $0x18] sm:$0xff]  ;;  %v445_v10 = vld [vmem:[#allocation8 + $0x10] sm:$0xff]  ;;  %s2458_s20 = smov 112   ;;  %s2459_s17 = smov 104  }
  0xed   : > { %v1987_v9 = vpack.c.bf16 %v444_v6, %v443_v4  ;;  %v446_v11 = vld [vmem:[#allocation8 + $0x18] sm:$0xff]  ;;  %v1996_v12 = vpack.c.bf16 %v450_v8, %v449_v7  ;;  %v441_v14 = vld [vmem:[%s374_s18] sm:$0xff]  ;;  %v453_v23 = vld [vmem:[#allocation11 + $0x10] sm:$0xff]  ;;  %s1851_s15 = sshll.u32 %s2435_s27, 7  ;;  %s439_s3 = scalar_lea.vmem [#allocation14], %s2806_s14 }
  0xee   : > { %1994 = vmatpush3.bf16.msra.mxu1 %v1993_v5  ;;  %v1990_v13 = vpack.c.bf16 %v446_v11, %v445_v10  ;;  %v440_v15 = vld [vmem:[%s365_s11] sm:$0xff]  ;;  %v451_v21 = vld [vmem:[#allocation11] sm:$0xff]  ;;  %v452_v22 = vld [vmem:[#allocation11 + $0x8] sm:$0xff]  ;;  %s1647_s10 = sshll.u32 %s439_s3, 4  ;;  %s3051_s22 = sld [smem:[#allocation29_spill]]  ;;  %s2935_s10 = int_to_ptr.vmem [resolvable:$true] %s1647_s10 }
  0xef   : > { %1988 = vmatpush3.bf16.msra.mxu0 %v1987_v9  ;;  %1995 = vmatprep.subr.bf16.mxu1 %v2454_v0  ;;  %v1999_v24 = vpack.c.bf16 %v452_v22, %v451_v21  ;;  %v454_v25 = vld [vmem:[#allocation11 + $0x18] sm:$0xff]  ;;  %v456_v60 = vld [vmem:[#allocation13 + $0x8] sm:$0xff]  ;;  %v455_v61 = vld [vmem:[#allocation13] sm:$0xff]  ;;  %s1633_s19 = scalar_lea.sflag [#allocation4], %s2803_s28  ;;  %s2349_s13 = scalar_lea.vmem %s2935_s10, 128 }
  0xf0   : > { %1989 = vmatprep.subr.bf16.mxu0 %v2454_v0  ;;  %v2002_v26 = vpack.c.bf16 %v454_v25, %v453_v23  ;;  %v442_v27 = vld [vmem:[%s383_s29] sm:$0xff]  ;;  %p2350_p13 = scmp.ne.s32.totalorder %s2935_s10, %s2349_s13  ;;  %p3052_p2 = scmp.ne.s32.totalorder %s3030_s21, 0 }
  0xf1   : > { %s2460_s27 = smov [#allocation14]  }
  0xf2   : > { %1997 = vmatpush3.bf16.msra.mxu1 %v1996_v12  ;;  %p2351_p1 = pnand %p2350_p13, %p3052_p2  ;;  %s2353_s5 = sshll.u32 %s2460_s27, 4  ;;  %s2354_s5 = int_to_ptr.vmem [resolvable:$false] %s2353_s5 }
  0xf3   : > { %1991 = vmatpush3.bf16.msra.mxu0 %v1990_v13  ;;  %1926 = vmatprep.subr.mxu1 %v2456_v1  ;;  %s2355_s9 = scalar_lea.vmem %s2354_s5, 256  ;;  %p2356_p8 = scmp.lt.s32.totalorder %s2935_s10, %s2354_s5 }
  0xf4   : > { %1998 = vmatprep.subr.bf16.mxu0 %v2454_v0  ;;  %s2933_s24 = scalar_lea.hbm %s3051_s22, %s1851_s15  ;;  %p2352_p12 = pneg %p2351_p1 }
  0xf5   : > { %1913 = vmatmul.mubr.msk.f32.vlgmr.msra.gmra.mrb[0].mxu1 %vm459_vm1, %v441_v14  ;;  %v457_v14 = vld [vmem:[#allocation13 + $0x10] sm:$0xff]  ;;  %p2357_p9 = scmp.lt.s32.totalorder %s2355_s9, %s2349_s13 }
  0xf6   : > { %1902 = vmatmul.mubr.msk.f32.vlgmr.msra.gmra.mrb[0].mxu0 %vm459_vm1, %v440_v15  ;;  %1928 = vmatprep.mubr.msk.f32.mxu1 %vm2455_vm0, %v2456_v1 }
  0xf7   : > { %1923 = vmatprep.mubr.msk.f32.mxu0 %vm2455_vm0, %v2456_v1  ;;  %2000 = vmatpush3.bf16.msra.mxu0 %v1999_v24  ;;  %p2358_p7 = por %p2357_p9, %p2356_p8 }
  0xf8   : > { %2001 = vmatprep.subr.bf16.mxu0 %v2454_v0 }
  0xf9   : > { %p2359_p11 = pnand %p2358_p7, %p2352_p12 }
  0xfb   : > { %2003 = vmatpush3.bf16.msra.mxu0 %v2002_v26 }
  0xfc   : > { %1946 = vmatprep.subr.mxu0 %v2456_v1 }
  0xfe   : > { %1924 = vmatmul.mubr.msk.f32.vlgmr.msra.gmra.mrb[2].mxu0 %vm459_vm1, %v442_v27 }
  0xff   : > { %1948 = vmatprep.mubr.msk.f32.mxu0 %vm2455_vm0, %v2456_v1  ;;  %1947 = vmatpush3.msra.mxu0 %v456_v60 }
 0x100   : > { %1951 = vmatprep.subr.mxu0 %v2456_v1 }
 0x1c8   : > { %v2844_v16 = vpop.f32.mrb[0].mxu1 }
 0x1c9   : > { %843 = vrot.lane.b32.xlu1 %v2844_v16, %s2457_s30  ;;  %v529_v17 = vpop.f32.mrb[0].mxu0  ;;  %v1914_v18 = vpop.f32.mrb[1].mxu1  ;;  %1927 = vmatpush3.xpose.msk.msra.mxu1 %vm680_vm2, %v2844_v16 }
 0x1ca   : > { %v2850_v19 = vmul.f32 0.35355338, %v529_v17  ;;  %v1903_v20 = vpop.f32.mrb[1].mxu0  ;;  %1931 = vmatprep.subr.mxu1 %v2456_v1 }
 0x1cc   : > { %1929 = vmatmul.mubr.msk.f32.vlgmr.msra.gmra.mrb[2].mxu1 %vm680_vm2, %v2850_v19 }
 0x1cd   : > { %841 = vrot.lane.b32.xlu1 %v2850_v19, %s2457_s30  ;;  %1933 = vmatprep.mubr.msk.f32.mxu1 %vm2455_vm0, %v2456_v1 }
 0x1d1   : > { %v2867_v36 = vpop.f32.mrb[2].mxu0 }
 0x1d2   : > { %v1925_v37 = vpop.f32.mrb[3].mxu0  ;;  %1932 = vmatpush3.msra.mxu1 %v2867_v36 }
 0x1d3   : > { %1936 = vmatprep.subr.mxu1 %v2456_v1 }
 0x23b   : > { %v844_v40 = vpop.permute.xlu1 %843 }
 0x23f   : > { %v842_v42 = vpop.permute.xlu1 %841 }
 0x29f   : > { %v753_v28 = vpop.f32.mrb[2].mxu1 }
 0x2a0   : > { %v1930_v29 = vpop.f32.mrb[3].mxu1  ;;  %v757_v30 = vsel %vm680_vm2, %v753_v28, -inf }
 0x2a1   : > { %758 = vmax.xlane.f32.xlu0 %v757_v30  ;;  %v458_v29 = vld [vmem:[#allocation13 + $0x18] sm:$0xff] }
 0x32e   : > { %v759_v31 = vpop.xlane.xlu0 %758 }
 0x32f   : > { %v760_v32 = vsub.f32 %v753_v28, %v759_v31 }
 0x331   : > { %v761_v33 = vmul.f32 1.442695, %v760_v32 }
 0x333   : > { %2131 = vpow2.f32 %v761_v33 }
 0x33d   : > { %v2132_v34 = vpop.eup %2131 }
 0x33e   : > { %v763_v35 = vsel %vm680_vm2, %v2132_v34, 0.0 }
 0x33f   : > { %764 = vadd.xlane.f32.xlu0 %v763_v35 }
 0x3cc   : > { %v765_v38 = vpop.xlane.xlu0 %764 }
 0x3cd   : > { %2133 = vrcp.f32 %v765_v38 }
 0x3d7   : > { %v2134_v39 = vpop.eup %2133 }
 0x3d8   : > { %v767_v41 = vmul.f32 %v2134_v39, %v2132_v34 }
 0x3da   : > { %1934 = vmatmul.mubr.msk.f32.vlgmr.msra.gmra.mrb[4].mxu1 %vm680_vm2, %v767_v41 }
 0x3db   : > { %1937 = vmatpush3.xpose.msk.msra.mxu1 %vm680_vm2, %v844_v40  ;;  %1938 = vmatprep.mubr.msk.f32.mxu1 %vm2455_vm0, %v2456_v1 }
 0x3dc   : > { %1941 = vmatprep.subr.mxu1 %v2456_v1 }
 0x3de   : > { %1939 = vmatmul.mubr.msk.f32.vlgmr.msra.gmra.mrb[6].mxu1 %vm680_vm2, %v842_v42 }
 0x3df   : > { %1943 = vmatprep.mubr.msk.f32.mxu1 %vm2455_vm0, %v2456_v1 }
 0x4ad   : > { %v837_v43 = vpop.f32.mrb[4].mxu1 }
 0x4ae   : > { %v1935_v44 = vpop.f32.mrb[5].mxu1 }
 0x4b1   : > { %v915_v45 = vpop.f32.mrb[6].mxu1 }
 0x4b2   : > { %v1940_v46 = vpop.f32.mrb[7].mxu1  ;;  %v919_v47 = vsel %vm680_vm2, %v915_v45, -inf }
 0x4b3   : > { %920 = vmax.xlane.f32.xlu0 %v919_v47 }
 0x4c9   : > { %931 = vrot.lane.b32.xlu0 %v2867_v36, %s2457_s30 }
 0x4cd   : > { %1155 = vrot.lane.b32.xlu0 %v2844_v16, %s2458_s20 }
 0x4d1   : > { %1153 = vrot.lane.b32.xlu0 %v2850_v19, %s2458_s20 }
 0x540   : > { %v921_v48 = vpop.xlane.xlu0 %920 }
 0x541   : > { %v922_v49 = vsub.f32 %v915_v45, %v921_v48 }
 0x543   : > { %v923_v50 = vmul.f32 1.442695, %v922_v49 }
 0x544   : > { %v932_v51 = vpop.permute.xlu0 %931 }
 0x545   : > { %2135 = vpow2.f32 %v923_v50  ;;  %1942 = vmatpush3.msra.mxu1 %v932_v51 }
 0x546   : > { %1956 = vmatprep.subr.mxu1 %v2456_v1 }
 0x548   : > { %v1156_v56 = vpop.permute.xlu0 %1155 }
 0x54c   : > { %v1154_v58 = vpop.permute.xlu0 %1153 }
 0x54f   : > { %v2136_v52 = vpop.eup %2135 }
 0x550   : > { %v925_v53 = vsel %vm680_vm2, %v2136_v52, 0.0 }
 0x551   : > { %926 = vadd.xlane.f32.xlu1 %v925_v53 }
 0x562   : > { %1242 = vrot.lane.b32.xlu1 %v2867_v36, %s2458_s20 }
 0x566   : > { %1394 = vrot.lane.b32.xlu1 %v2844_v16, %s2459_s17 }
 0x5de   : > { %v927_v54 = vpop.xlane.xlu1 %926 }
 0x5df   : > { %2137 = vrcp.f32 %v927_v54 }
 0x5e2   : > { %v1243_v59 = vpop.permute.xlu1 %1242 }
 0x5e6   : > { %v1395_v9 = vpop.permute.xlu1 %1394 }
 0x5e9   : > { %v2138_v55 = vpop.eup %2137 }
 0x5ea   : > { %v929_v57 = vmul.f32 %v2138_v55, %v2136_v52 }
 0x5ec   : > { %1944 = vmatmul.mubr.msk.f32.vlgmr.msra.gmra.mrb[8].mxu1 %vm680_vm2, %v929_v57 }
 0x5ed   : > { %1957 = vmatpush3.xpose.msk.msra.mxu1 %vm680_vm2, %v1156_v56  ;;  %1958 = vmatprep.mubr.msk.f32.mxu1 %vm2455_vm0, %v2456_v1 }
 0x5ee   : > { %1961 = vmatprep.subr.mxu1 %v2456_v1 }
 0x5f0   : > { %1959 = vmatmul.mubr.msk.f32.vlgmr.msra.gmra.mrb[10].mxu1 %vm680_vm2, %v1154_v58 }
 0x5f1   : > { %1962 = vmatpush3.msra.mxu1 %v1243_v59  ;;  %1963 = vmatprep.mubr.msk.f32.mxu1 %vm2455_vm0, %v2456_v1 }
 0x5f2   : > { %1971 = vmatprep.subr.mxu1 %v2456_v1 }
 0x6bf   : > { %v1003_v62 = vpop.f32.mrb[8].mxu1 }
 0x6c0   : > { %v1945_v63 = vpop.f32.mrb[9].mxu1  ;;  %1949 = vmatmul.mubr.msk.f32.vlgmr.msra.gmra.mrb[4].mxu0 %vm680_vm2, %v1003_v62 }
 0x6c1   : > { %1952 = vmatpush3.msra.mxu0 %v455_v61  ;;  %1953 = vmatprep.mubr.msk.f32.mxu0 %vm2455_vm0, %v2456_v1 }
 0x6c2   : > { %1966 = vmatprep.subr.mxu0 %v2456_v1 }
 0x6c3   : > { %v1227_v0 = vpop.f32.mrb[10].mxu1 }
 0x6c4   : > { %v1960_v2 = vpop.f32.mrb[11].mxu1  ;;  %v1231_v3 = vsel %vm680_vm2, %v1227_v0, -inf }
 0x6c5   : > { %1232 = vmax.xlane.f32.xlu0 %v1231_v3 }
 0x6c8   : > { %1954 = vmatmul.mubr.msk.f32.vlgmr.msra.gmra.mrb[4].mxu0 %vm680_vm2, %v837_v43 }
 0x6c9   : > { %1968 = vmatprep.mubr.msk.f32.mxu0 %vm2455_vm0, %v2456_v1  ;;  %1967 = vmatpush3.msra.mxu0 %v457_v14 }
 0x6ca   : > { %1976 = vmatprep.subr.mxu0 %v2456_v1 }
 0x752   : > { %v1233_v4 = vpop.xlane.xlu0 %1232 }
 0x753   : > { %v1234_v5 = vsub.f32 %v1227_v0, %v1233_v4 }
 0x755   : > { %v1235_v6 = vmul.f32 1.442695, %v1234_v5 }
 0x757   : > { %2139 = vpow2.f32 %v1235_v6 }
 0x761   : > { %v2140_v7 = vpop.eup %2139 }
 0x762   : > { %v1237_v8 = vsel %vm680_vm2, %v2140_v7, 0.0 }
 0x763   : > { %1238 = vadd.xlane.f32.xlu1 %v1237_v8 }
 0x774   : > { %1392 = vrot.lane.b32.xlu1 %v2850_v19, %s2459_s17 }
 0x7f0   : > { %v1239_v10 = vpop.xlane.xlu1 %1238 }
 0x7f1   : > { %2141 = vrcp.f32 %v1239_v10 }
 0x7f4   : > { %v1393_v13 = vpop.permute.xlu1 %1392 }
 0x7fb   : > { %v2142_v11 = vpop.eup %2141 }
 0x7fc   : > { %v1241_v12 = vmul.f32 %v2142_v11, %v2140_v7 }
 0x7fe   : > { %1964 = vmatmul.mubr.msk.f32.vlgmr.msra.gmra.mrb[12].mxu1 %vm680_vm2, %v1241_v12 }
 0x7ff   : > { %1972 = vmatpush3.xpose.msk.msra.mxu1 %vm680_vm2, %v1395_v9  ;;  %1973 = vmatprep.mubr.msk.f32.mxu1 %vm2455_vm0, %v2456_v1 }
 0x802   : > { %1974 = vmatmul.mubr.msk.f32.vlgmr.msra.gmra.mrb[14].mxu1 %vm680_vm2, %v1393_v13 }
 0x8d1   : > { %v1314_v15 = vpop.f32.mrb[12].mxu1 }
 0x8d2   : > { %v1965_v16 = vpop.f32.mrb[13].mxu1  ;;  %1969 = vmatmul.mubr.msk.f32.vlgmr.msra.gmra.mrb[4].mxu0 %vm680_vm2, %v1314_v15 }
 0x8d3   : > { %1978 = vmatprep.mubr.msk.f32.mxu0 %vm2455_vm0, %v2456_v1 }
 0x8d5   : > { %v1466_v17 = vpop.f32.mrb[14].mxu1 }
 0x8d6   : > { %v1975_v18 = vpop.f32.mrb[15].mxu1  ;;  %v1470_v19 = vsel %vm680_vm2, %v1466_v17, -inf }
 0x8d7   : > { %1471 = vmax.xlane.f32.xlu0 %v1470_v19 }
 0x8ed   : > { %1481 = vrot.lane.b32.xlu0 %v2867_v36, %s2459_s17 }
 0x964   : > { %v1472_v20 = vpop.xlane.xlu0 %1471 }
 0x965   : > { %v1473_v21 = vsub.f32 %v1466_v17, %v1472_v20 }
 0x967   : > { %v1474_v22 = vmul.f32 1.442695, %v1473_v21 }
 0x968   : > { %v1482_v23 = vpop.permute.xlu0 %1481 }
 0x969   : > { %2143 = vpow2.f32 %v1474_v22  ;;  %1977 = vmatpush3.msra.mxu0 %v1482_v23 }
 0x96a   : > { %1981 = vmatprep.subr.mxu0 %v2456_v1 }
 0x973   : > { %v2144_v24 = vpop.eup %2143 }
 0x974   : > { %v1476_v25 = vsel %vm680_vm2, %v2144_v24, 0.0 }
 0x975   : > { %1477 = vadd.xlane.f32.xlu1 %v1476_v25 }
 0xa02   : > { %v1478_v26 = vpop.xlane.xlu1 %1477 }
 0xa03   : > { %2145 = vrcp.f32 %v1478_v26 }
 0xa0d   : > { %v2146_v27 = vpop.eup %2145 }
 0xa0e   : > { %v1480_v28 = vmul.f32 %v2146_v27, %v2144_v24 }
 0xa10   : > { %1979 = vmatmul.mubr.msk.f32.vlgmr.msra.gmra.mrb[6].mxu0 %vm680_vm2, %v1480_v28 }
 0xa11   : > { %1982 = vmatpush3.msra.mxu0 %v458_v29  ;;  %1983 = vmatprep.mubr.msk.f32.mxu0 %vm2455_vm0, %v2456_v1 }
 0xae3   : > { %v1553_v30 = vpop.f32.mrb[6].mxu0 }
 0xae4   : > { %v1980_v31 = vpop.f32.mrb[7].mxu0  ;;  %1984 = vmatmul.mubr.msk.f32.vlgmr.msra.gmra.mrb[4].mxu0 %vm680_vm2, %v1553_v30 }
 0xbb7   : > { %v1626_v32 = vpop.f32.mrb[4].mxu0 }
 0xbb8   : > { %1631 = vst.msk [vmem:[%s439_s3] sm:$0xff] %vm459_vm1, %v1626_v32  ;;  %v1985_v1 = vpop.f32.mrb[5].mxu0 }
 0xbb9   : > { %2362 = shalt.err (!%p2359_p11)
}
 0xbba   : > { %s2363_s1 = scalar_lea.hbm %s2933_s24, 128  ;;  %s2367_s16 = scalar_lea.hbm %s3051_s22, 256 }
 0xbbb   : > { %p2364_p5 = scmp.ne.s32.totalorder %s2933_s24, %s2363_s1  ;;  %p2368_p0 = scmp.lt.u32.totalorder %s2933_s24, %s3051_s22 }
 0xbbc   : > { %p2369_p4 = scmp.lt.u32.totalorder %s2367_s16, %s2363_s1  ;;  %p2371_p13 = scmp.lt.u32.totalorder %s2363_s1, %s2933_s24 }
 0xbbd   : > { %p2365_p3 = pnand %p2364_p5, %p3052_p2 }
 0xbbe   : > { %p2370_p10 = por %p2369_p4, %p2368_p0 }
 0xbbf   : > { %p2366_p6 = pneg %p2365_p3 }
 0xbc0   : > { %p2372_p1 = por %p2371_p13, %p2370_p10 }
 0xbc2   : > { %p2373_p12 = pnand %p2372_p1, %p2366_p6 }
 0xbc4   : > { %2376 = shalt.err (!%p2373_p12)
}
 0xbc5   : > { %2032 = dma.vmem_to_hbm [thread:$0]  (%p3052_p2), %s2935_s10, 128, %s2933_s24, %s1633_s19  }
 0xbc6 PF: > { %s3053_s23 = sld [smem:[#allocation20_spill]]  ;;  %s3054_s18 = sld [smem:[#allocation25_spill]] }
 0xbc7   : > { %s3055_s29 = sld [smem:[#allocation22_spill]] }
 0xbcc   : > { %s1659_s30 = sand.u32 1, %s3053_s23   ;;  %p3056_p8 = scmp.ne.s32.totalorder %s3054_s18, 0 }
 0xbcd   : > { %p3057_p9 = scmp.ge.s32.totalorder %s3055_s29, 2  ;;  %s1660_s20 = scalar_lea.sflag [#allocation4], %s1659_s30 }
 0xbcf   : > { %p2058_p7 = pnand %p3057_p9, %p3056_p8 }
 0xbd1   : > { %2418 = dma.done.wait (!%p2058_p7), %s1660_s20, 128  }
 0xbd2   : > { %2420 = vsyncadd (!%p2058_p7), %s1660_s20, 4294967168  ;;  %s28_s29 = sadd.s32 1, %s3055_s29   ;;  %s3058_s21 = sld [smem:[#allocation24_spill]] }
 0xbd3   : > { %p25_p11 = scmp.ge.s32.totalorder %s28_s29, 4   ;;  %s3059_s27 = sld [smem:[#allocation21_spill]] }
 0xbd4   : > { %s3060_s28 = sld [smem:[#allocation23_spill]]  ;;  %s3061_s24 = smov %s2427_s25 }
 0xbd5   : > { %s3062_s25 = smov %s2431_s26  ;;  %27 = sbr.rel (!%p25_p11) target bundleno = 15 (0xf), region = 133 }
 0xbd8   : > { %s3063_s26 = smov %s3058_s21 }
 0xbdc   :  { %1665 = vsyncpa [#allocation3], 1 }
 0xbdd   :  { %1667 = vsyncpa [#allocation3 + $0x1], 1 }
 0xbde   :  { %1668 = vsyncpa [#allocation6], 1 }
 0xbdf   :  { %1670 = vsyncpa [#allocation6 + $0x1], 1 }
 0xbe0   :  { %1671 = vsyncpa [#allocation9], 1 }
 0xbe1   :  { %1672 = vsyncpa [#allocation12], 1 }
 0xbe2   :  { %1673 = vsyncpa [#allocation4], 1 }
 0xbe3   :  { %1675 = vsyncpa [#allocation4 + $0x1], 1 }

</bundles_post_ra>
